<compile_context>
chip_gen: v7x
topology: tpu7x:2x2x1
jax: 0.10.0
libtpu: 0.0.40
codegen_flags: <defaults>
</compile_context>

<pallas_src>
import jax
import jax.numpy as jnp
from jax.experimental import pallas as pl
from jax.experimental.pallas import tpu as pltpu

LANE = 128      # lane width: hidden feature dim is padded to a multiple of this
SUBLANE = 8     # sublane width: batch tile must be a multiple of this


def _round_up(n, m):
    return ((n + m - 1) // m) * m


def _batch_dim_semantics():
    # v7x has 2 TensorCores per chip: CORE_PARALLEL shards the batch grid across
    # both.  On single-core parts (v5e/v6e) plain "parallel" is kept (near-zero
    # codegen effect, but harmless).
    kind = jax.devices()[0].device_kind.lower()
    if "v7" in kind or "7x" in kind:
        return (pltpu.CORE_PARALLEL,)
    return ("parallel",)


def qnet_kernel(x_ref, w1_ref, b1_ref, w2_ref, b2_ref, w3_ref, b3_ref, o_ref):
    x = x_ref[...]                                  # (tb, in_dim) f32
    tb, in_dim = x.shape
    mid_p = w1_ref.shape[1]

    # ---- Layer 1: Linear + ReLU -------------------------------------------
    if in_dim <= 8:
        # Tiny K: VPU broadcast-MACs into an f32 accumulator; leaves the MXU
        # free for the two 128-wide layers (shortens the per-step critical path).
        h1 = jnp.broadcast_to(b1_ref[...], (tb, mid_p))
        for k in range(in_dim):                     # static unroll (in_dim small)
            h1 = h1 + x[:, k:k + 1] * w1_ref[k:k + 1, :]
    else:
        h1 = jnp.dot(x, w1_ref[...], preferred_element_type=jnp.float32) + b1_ref[...]
    h1 = jnp.maximum(h1, 0.0)

    # ---- Layer 2: Linear + ReLU (full-width 128x128 MXU pass) --------------
    h2 = jnp.dot(h1, w2_ref[...], preferred_element_type=jnp.float32)
    h2 = jnp.maximum(h2 + b2_ref[...], 0.0)

    # ---- Output layer: Linear, narrow (tb, output_dim) store ---------------
    out = jnp.dot(h2, w3_ref[...], preferred_element_type=jnp.float32)
    o_ref[...] = (out + b3_ref[...]).astype(o_ref.dtype)


def qnetwork_forward(x, params, *, block_b=1024):
    """x: [B, input_dim] f32.  params: w1 [in, MID_P], b1 [1, MID_P],
    w2 [MID_P, MID_P], b2 [1, MID_P], w3 [MID_P, output_dim], b3 [1, output_dim]
    (MID_P = 128-padded hidden dim).  Returns [B, output_dim] f32."""
    w1, b1, w2, b2, w3, b3 = (params[k] for k in ("w1", "b1", "w2", "b2", "w3", "b3"))
    B, in_dim = x.shape
    output_dim = w3.shape[1]

    # Batch tile: always a multiple of the sublane width (even for odd block_b).
    tb = min(_round_up(block_b, SUBLANE), _round_up(B, SUBLANE))
    b_pad = _round_up(B, tb)
    if b_pad != B:
        x = jnp.pad(x, ((0, b_pad - B), (0, 0)))
    grid = (b_pad // tb,)

    # Weights/biases: constant index_map -> stay resident in VMEM across steps.
    resident = lambda a: pl.BlockSpec(a.shape, lambda i: (0,) * a.ndim)

    out = pl.pallas_call(
        qnet_kernel,
        out_shape=jax.ShapeDtypeStruct((b_pad, output_dim), jnp.float32),
        grid=grid,
        in_specs=[
            pl.BlockSpec((tb, in_dim), lambda i: (i, 0)),   # x streams per tile
            resident(w1), resident(b1),
            resident(w2), resident(b2),
            resident(w3), resident(b3),
        ],
        # Block covers the full (narrow) feature dim: only output_dim*4 B/row of
        # HBM writeback, no padded-lane store and no post-kernel slice copy.
        out_specs=pl.BlockSpec((tb, output_dim), lambda i: (i, 0)),
        compiler_params=pltpu.CompilerParams(
            dimension_semantics=_batch_dim_semantics(),
        ),
    )(x, w1, b1, w2, b2, w3, b3)

    return out if b_pad == B else out[:B]


def init_params(key, input_dim, middle_dim, output_dim):
    """nn.Linear-style init (uniform +/- 1/sqrt(fan_in)) on the true dims; the
    hidden feature dim is then zero-padded to a multiple of 128 lanes (exact:
    zero rows/cols + zero bias + ReLU(0)=0).  Input/output dims stay narrow."""
    mid_p = _round_up(middle_dim, LANE)
    ks = jax.random.split(key, 6)

    def lin(kw, kb, fan_in, fan_out, fan_in_p, fan_out_p):
        bound = float(fan_in) ** -0.5
        w = jax.random.uniform(kw, (fan_in, fan_out), jnp.float32, -bound, bound)
        b = jax.random.uniform(kb, (1, fan_out), jnp.float32, -bound, bound)
        w = jnp.pad(w, ((0, fan_in_p - fan_in), (0, fan_out_p - fan_out)))
        b = jnp.pad(b, ((0, 0), (0, fan_out_p - fan_out)))
        return w, b

    w1, b1 = lin(ks[0], ks[1], input_dim, middle_dim, input_dim, mid_p)
    w2, b2 = lin(ks[2], ks[3], middle_dim, middle_dim, mid_p, mid_p)
    w3, b3 = lin(ks[4], ks[5], middle_dim, output_dim, mid_p, output_dim)
    return dict(w1=w1, b1=b1, w2=w2, b2=b2, w3=w3, b3=b3)


def _reference(x, params):
    # Zero-padding of the hidden dim is exact, so this matches the unpadded
    # PyTorch forward.
    h1 = jnp.maximum(x @ params["w1"] + params["b1"], 0.0)
    h2 = jnp.maximum(h1 @ params["w2"] + params["b2"], 0.0)
    return h2 @ params["w3"] + params["b3"]


if __name__ == "__main__":
    # CartPole-ish sizes: obs dim 4, hidden 32, 2 actions.
    input_dim, middle_dim, output_dim = 4, 32, 2

    key = jax.random.PRNGKey(0)
    kx, kp, kx2 = jax.random.split(key, 3)
    params = init_params(kp, input_dim, middle_dim, output_dim)

    # Small batch (single grid step).
    B = 8
    x = jax.random.normal(kx, (B, input_dim), jnp.float32)
    out = qnetwork_forward(x, params)
    jax.block_until_ready(out)
    ref = _reference(x, params)
    assert out.shape == (B, output_dim)
    assert jnp.allclose(out, ref, atol=1e-5, rtol=1e-5)

    # Non-aligned batch + non-multiple-of-8 block_b: exercises the batched grid,
    # row padding, and the tb rounding fix (block_b=100 -> tb=104).
    B2 = 300
    x2 = jax.random.normal(kx2, (B2, input_dim), jnp.float32)
    out2 = qnetwork_forward(x2, params, block_b=100)
    jax.block_until_ready(out2)
    ref2 = _reference(x2, params)
    assert out2.shape == (B2, output_dim)
    assert jnp.allclose(out2, ref2, atol=1e-5, rtol=1e-5)

    print("KERNEL_OK")
</pallas_src>

<mosaic_0001>
module attributes {stable_mosaic.version = 11 : i64} {
  func.func @qnet_kernel(%arg0: i32, %arg1: memref<8x4xf32, #tpu.memory_space<vmem>>, %arg2: memref<4x128xf32, #tpu.memory_space<vmem>>, %arg3: memref<1x128xf32, #tpu.memory_space<vmem>>, %arg4: memref<128x128xf32, #tpu.memory_space<vmem>>, %arg5: memref<1x128xf32, #tpu.memory_space<vmem>>, %arg6: memref<128x2xf32, #tpu.memory_space<vmem>>, %arg7: memref<1x2xf32, #tpu.memory_space<vmem>>, %arg8: memref<8x2xf32, #tpu.memory_space<vmem>>) attributes {dimension_semantics = [#tpu.dimension_semantics<parallel>], iteration_bounds = array<i64: 1>, scalar_prefetch = 0 : i64, scratch_operands = 0 : i64, tpu.core_type = #tpu.core_type<tc>, window_params = [{transform_indices = @transform_0, window_bounds = array<i64: 8, 4>}, {pipeline_mode = #tpu.pipeline_mode<synchronous>, transform_indices = @transform_1, window_bounds = array<i64: 4, 128>}, {pipeline_mode = #tpu.pipeline_mode<synchronous>, transform_indices = @transform_2, window_bounds = array<i64: 1, 128>}, {pipeline_mode = #tpu.pipeline_mode<synchronous>, transform_indices = @transform_3, window_bounds = array<i64: 128, 128>}, {pipeline_mode = #tpu.pipeline_mode<synchronous>, transform_indices = @transform_4, window_bounds = array<i64: 1, 128>}, {pipeline_mode = #tpu.pipeline_mode<synchronous>, transform_indices = @transform_5, window_bounds = array<i64: 128, 2>}, {pipeline_mode = #tpu.pipeline_mode<synchronous>, transform_indices = @transform_6, window_bounds = array<i64: 1, 2>}, {transform_indices = @transform_7, window_bounds = array<i64: 8, 2>}]} {
    %c0 = arith.constant 0 : index
    %c0_0 = arith.constant 0 : index
    %0 = vector.load %arg1[%c0, %c0_0] : memref<8x4xf32, #tpu.memory_space<vmem>>, vector<8x4xf32>
    %c0_1 = arith.constant 0 : index
    %c0_2 = arith.constant 0 : index
    %1 = vector.load %arg3[%c0_1, %c0_2] : memref<1x128xf32, #tpu.memory_space<vmem>>, vector<1x128xf32>
    %2 = vector.shape_cast %1 : vector<1x128xf32> to vector<1x128xf32>
    %3 = vector.broadcast %2 : vector<1x128xf32> to vector<8x128xf32>
    %4 = vector.extract_strided_slice %0 {offsets = [0, 0], sizes = [8, 1], strides = [1, 1]} : vector<8x4xf32> to vector<8x1xf32>
    %c0_3 = arith.constant 0 : index
    %c0_4 = arith.constant 0 : index
    %5 = vector.load %arg2[%c0_3, %c0_4] : memref<4x128xf32, #tpu.memory_space<vmem>>, vector<1x128xf32>
    %6 = vector.broadcast %4 : vector<8x1xf32> to vector<8x128xf32>
    %7 = vector.broadcast %5 : vector<1x128xf32> to vector<8x128xf32>
    %8 = arith.mulf %6, %7 : vector<8x128xf32>
    %9 = arith.addf %3, %8 : vector<8x128xf32>
    %10 = vector.extract_strided_slice %0 {offsets = [0, 1], sizes = [8, 1], strides = [1, 1]} : vector<8x4xf32> to vector<8x1xf32>
    %c1 = arith.constant 1 : index
    %c0_5 = arith.constant 0 : index
    %11 = vector.load %arg2[%c1, %c0_5] : memref<4x128xf32, #tpu.memory_space<vmem>>, vector<1x128xf32>
    %12 = vector.broadcast %10 : vector<8x1xf32> to vector<8x128xf32>
    %13 = vector.broadcast %11 : vector<1x128xf32> to vector<8x128xf32>
    %14 = arith.mulf %12, %13 : vector<8x128xf32>
    %15 = arith.addf %9, %14 : vector<8x128xf32>
    %16 = vector.extract_strided_slice %0 {offsets = [0, 2], sizes = [8, 1], strides = [1, 1]} : vector<8x4xf32> to vector<8x1xf32>
    %c2 = arith.constant 2 : index
    %c0_6 = arith.constant 0 : index
    %17 = vector.load %arg2[%c2, %c0_6] : memref<4x128xf32, #tpu.memory_space<vmem>>, vector<1x128xf32>
    %18 = vector.broadcast %16 : vector<8x1xf32> to vector<8x128xf32>
    %19 = vector.broadcast %17 : vector<1x128xf32> to vector<8x128xf32>
    %20 = arith.mulf %18, %19 : vector<8x128xf32>
    %21 = arith.addf %15, %20 : vector<8x128xf32>
    %22 = vector.extract_strided_slice %0 {offsets = [0, 3], sizes = [8, 1], strides = [1, 1]} : vector<8x4xf32> to vector<8x1xf32>
    %c3 = arith.constant 3 : index
    %c0_7 = arith.constant 0 : index
    %23 = vector.load %arg2[%c3, %c0_7] : memref<4x128xf32, #tpu.memory_space<vmem>>, vector<1x128xf32>
    %24 = vector.broadcast %22 : vector<8x1xf32> to vector<8x128xf32>
    %25 = vector.broadcast %23 : vector<1x128xf32> to vector<8x128xf32>
    %26 = arith.mulf %24, %25 : vector<8x128xf32>
    %27 = arith.addf %21, %26 : vector<8x128xf32>
    %cst = arith.constant 0.000000e+00 : f32
    %28 = vector.broadcast %cst : f32 to vector<8x128xf32>
    %29 = arith.maximumf %27, %28 : vector<8x128xf32>
    %c0_8 = arith.constant 0 : index
    %c0_9 = arith.constant 0 : index
    %30 = vector.load %arg4[%c0_8, %c0_9] : memref<128x128xf32, #tpu.memory_space<vmem>>, vector<128x128xf32>
    %cst_10 = arith.constant dense<0.000000e+00> : vector<8x128xf32>
    %31 = tpu.matmul %29, %30, %cst_10 {dimension_numbers = #tpu.dot_dimension_numbers<[1], [0], [0], [1], [0, 0, 1, 1], [], []>} : vector<8x128xf32>, vector<128x128xf32>, vector<8x128xf32> -> vector<8x128xf32>
    %c0_11 = arith.constant 0 : index
    %c0_12 = arith.constant 0 : index
    %32 = vector.load %arg5[%c0_11, %c0_12] : memref<1x128xf32, #tpu.memory_space<vmem>>, vector<1x128xf32>
    %33 = vector.broadcast %32 : vector<1x128xf32> to vector<8x128xf32>
    %34 = arith.addf %31, %33 : vector<8x128xf32>
    %cst_13 = arith.constant 0.000000e+00 : f32
    %35 = vector.broadcast %cst_13 : f32 to vector<8x128xf32>
    %36 = arith.maximumf %34, %35 : vector<8x128xf32>
    %c0_14 = arith.constant 0 : index
    %c0_15 = arith.constant 0 : index
    %37 = vector.load %arg6[%c0_14, %c0_15] : memref<128x2xf32, #tpu.memory_space<vmem>>, vector<128x2xf32>
    %cst_16 = arith.constant dense<0.000000e+00> : vector<8x2xf32>
    %38 = tpu.matmul %36, %37, %cst_16 {dimension_numbers = #tpu.dot_dimension_numbers<[1], [0], [0], [1], [0, 0, 1, 1], [], []>} : vector<8x128xf32>, vector<128x2xf32>, vector<8x2xf32> -> vector<8x2xf32>
    %c0_17 = arith.constant 0 : index
    %c0_18 = arith.constant 0 : index
    %39 = vector.load %arg7[%c0_17, %c0_18] : memref<1x2xf32, #tpu.memory_space<vmem>>, vector<1x2xf32>
    %40 = vector.broadcast %39 : vector<1x2xf32> to vector<8x2xf32>
    %41 = arith.addf %38, %40 : vector<8x2xf32>
    %c0_19 = arith.constant 0 : index
    %c0_20 = arith.constant 0 : index
    %42 = vector.load %arg8[%c0_19, %c0_20] : memref<8x2xf32, #tpu.memory_space<vmem>>, vector<8x2xf32>
    tpu.vector_store %arg8[%c0_19, %c0_20], %41 {strides = array<i32>} : memref<8x2xf32, #tpu.memory_space<vmem>>, vector<8x2xf32>,
    return
  }
  func.func @transform_0(%arg0: i32) -> (i32, i32) {
    %c0_i32 = arith.constant 0 : i32
    %c0_i32_0 = arith.constant 0 : i32
    return %arg0, %c0_i32 : i32, i32
  }
  func.func @transform_1(%arg0: i32) -> (i32, i32) {
    %c0_i32 = arith.constant 0 : i32
    %c0_i32_0 = arith.constant 0 : i32
    %c0_i32_1 = arith.constant 0 : i32
    return %c0_i32, %c0_i32_0 : i32, i32
  }
  func.func @transform_2(%arg0: i32) -> (i32, i32) {
    %c0_i32 = arith.constant 0 : i32
    %c0_i32_0 = arith.constant 0 : i32
    %c0_i32_1 = arith.constant 0 : i32
    return %c0_i32, %c0_i32_0 : i32, i32
  }
  func.func @transform_3(%arg0: i32) -> (i32, i32) {
    %c0_i32 = arith.constant 0 : i32
    %c0_i32_0 = arith.constant 0 : i32
    %c0_i32_1 = arith.constant 0 : i32
    return %c0_i32, %c0_i32_0 : i32, i32
  }
  func.func @transform_4(%arg0: i32) -> (i32, i32) {
    %c0_i32 = arith.constant 0 : i32
    %c0_i32_0 = arith.constant 0 : i32
    %c0_i32_1 = arith.constant 0 : i32
    return %c0_i32, %c0_i32_0 : i32, i32
  }
  func.func @transform_5(%arg0: i32) -> (i32, i32) {
    %c0_i32 = arith.constant 0 : i32
    %c0_i32_0 = arith.constant 0 : i32
    %c0_i32_1 = arith.constant 0 : i32
    return %c0_i32, %c0_i32_0 : i32, i32
  }
  func.func @transform_6(%arg0: i32) -> (i32, i32) {
    %c0_i32 = arith.constant 0 : i32
    %c0_i32_0 = arith.constant 0 : i32
    %c0_i32_1 = arith.constant 0 : i32
    return %c0_i32, %c0_i32_0 : i32, i32
  }
  func.func @transform_7(%arg0: i32) -> (i32, i32) {
    %c0_i32 = arith.constant 0 : i32
    %c0_i32_0 = arith.constant 0 : i32
    return %arg0, %c0_i32 : i32, i32
  }
}

</mosaic_0001>

<bundles_post_ra>
// kernel: tpu_custom_call.1
= control target key start
LH: loop header
LB: loop body
LE: loop exit
PB: predicated region body
PF: predicated region fallthrough
CT: control target
= control target key end

     0   :  { %v444_v0 = vmov 0   ;;  %v445_v2 = vmov 2   ;;  %v446_v8 = vmov 0.0|0.0   ;;  %v447_v12 = vmov 1   ;;  %s630_s0 = inlined_call_operand.vmem [shape: f32[8,4], index: 0, kind: input, shape index: {}]   ;;  %s631_s3 = inlined_call_operand.vmem [shape: f32[128,128], index: 3, kind: input, shape index: {}]   ;;  %s632_s5 = inlined_call_operand.vmem [shape: f32[128,2], index: 5, kind: input, shape index: {}]   ;;  %s633_s1 = inlined_call_operand.vmem [shape: f32[4,128], index: 1, kind: input, shape index: {}]   ;;  %s634_s2 = inlined_call_operand.vmem [shape: f32[1,128], index: 2, kind: input, shape index: {}]   ;;  %s635_s4 = inlined_call_operand.vmem [shape: f32[1,128], index: 4, kind: input, shape index: {}]   ;;  %s636_s6 = inlined_call_operand.vmem [shape: f32[1,2], index: 6, kind: input, shape index: {}]   ;;  %s637_s7 = inlined_call_operand.vmem [shape: f32[8,2], index: 7, kind: output, shape index: {}]  }
   0x1   :  { %439 = vset.pattern.permute.xlu0 %v444_v0  ;;  %v26_v1 = vld [vmem:[%s630_s0] sm:$0xff]  ;;  %441 = vset.pattern.permute.xlu1 %v445_v2  ;;  %v81_v4 = vld [vmem:[%s631_s3 + $0x8] sm:$0xff]  ;;  %v82_v6 = vld [vmem:[%s631_s3 + $0x10] sm:$0xff]  ;;  %v448_v13 = vmov 3   ;;  %vm449_vm0 = vmmov 0   ;;  %v450_v21 = vmov 0.0  }
   0x2   :  { %v80_v3 = vld [vmem:[%s631_s3] sm:$0xff]  ;;  %37 = vperm.xlu0 %439, %v26_v1   ;;  %59 = vperm.xlu1 %441, %v26_v1   ;;  %v83_v7 = vld [vmem:[%s631_s3 + $0x18] sm:$0xff]  ;;  %v85_v11 = vld [vmem:[%s631_s3 + $0x28] sm:$0xff]  ;;  %vm267_vm1 = vcmask 15360  }
   0x3   :  { %v385_v5 = vpack.c.bf16 %v81_v4, %v80_v3  ;;  %384 = vmatprep.subr.bf16.mxu0 %v446_v8  ;;  %408 = vmatprep.subr.bf16.mxu1 %v446_v8  ;;  %v388_v9 = vpack.c.bf16 %v83_v7, %v82_v6  ;;  %v84_v10 = vld [vmem:[%s631_s3 + $0x20] sm:$0xff]  ;;  %v86_v15 = vld [vmem:[%s631_s3 + $0x30] sm:$0xff]  ;;  %v87_v16 = vld [vmem:[%s631_s3 + $0x38] sm:$0xff] }
   0x4   :  { %v391_v14 = vpack.c.bf16 %v85_v11, %v84_v10  ;;  %v394_v17 = vpack.c.bf16 %v87_v16, %v86_v15  ;;  %v88_v18 = vld [vmem:[%s631_s3 + $0x40] sm:$0xff]  ;;  %v89_v19 = vld [vmem:[%s631_s3 + $0x48] sm:$0xff]  ;;  %346 = vmatprep.mubr.msk.f32.mxu0 %vm449_vm0, %v450_v21  ;;  %v90_v22 = vld [vmem:[%s631_s3 + $0x50] sm:$0xff]  ;;  %381 = vmatprep.mubr.msk.f32.mxu1 %vm449_vm0, %v450_v21 }
   0x5   :  { %386 = vmatpush3.bf16.msra.mxu0 %v385_v5  ;;  %v397_v20 = vpack.c.bf16 %v89_v19, %v88_v18  ;;  %v91_v23 = vld [vmem:[%s631_s3 + $0x58] sm:$0xff]  ;;  %v174_v24 = vld [vmem:[%s632_s5] sm:$0xff]  ;;  %v175_v25 = vld [vmem:[%s632_s5 + $0x8] sm:$0xff] }
   0x6   :  { %387 = vmatprep.subr.bf16.mxu0 %v446_v8  ;;  %440 = vset.pattern.permute.xlu0 %v447_v12  ;;  %v176_v26 = vld [vmem:[%s632_s5 + $0x10] sm:$0xff]  ;;  %v409_v27 = vpack.c.bf16 %v175_v25, %v174_v24  ;;  %v177_v28 = vld [vmem:[%s632_s5 + $0x18] sm:$0xff]  ;;  %v400_v29 = vpack.c.bf16 %v91_v23, %v90_v22  ;;  %v92_v30 = vld [vmem:[%s631_s3 + $0x60] sm:$0xff] }
   0x7   :  { %442 = vset.pattern.permute.xlu1 %v448_v13  ;;  %48 = vperm.xlu0 %440, %v26_v1   ;;  %v93_v31 = vld [vmem:[%s631_s3 + $0x68] sm:$0xff]  ;;  %v412_v32 = vpack.c.bf16 %v177_v28, %v176_v26  ;;  %v178_v33 = vld [vmem:[%s632_s5 + $0x20] sm:$0xff]  ;;  %v94_v36 = vld [vmem:[%s631_s3 + $0x70] sm:$0xff] }
   0x8   :  { %70 = vperm.xlu1 %442, %v26_v1   ;;  %410 = vmatpush3.bf16.msra.mxu1 %v409_v27  ;;  %v179_v34 = vld [vmem:[%s632_s5 + $0x28] sm:$0xff]  ;;  %v403_v35 = vpack.c.bf16 %v93_v31, %v92_v30  ;;  %v95_v37 = vld [vmem:[%s631_s3 + $0x78] sm:$0xff]  ;;  %v180_v39 = vld [vmem:[%s632_s5 + $0x30] sm:$0xff] }
   0x9   :  { %389 = vmatpush3.bf16.msra.mxu0 %v388_v9  ;;  %411 = vmatprep.subr.bf16.mxu1 %v446_v8  ;;  %v415_v38 = vpack.c.bf16 %v179_v34, %v178_v33  ;;  %v181_v40 = vld [vmem:[%s632_s5 + $0x38] sm:$0xff]  ;;  %v406_v41 = vpack.c.bf16 %v95_v37, %v94_v36  ;;  %v182_v43 = vld [vmem:[%s632_s5 + $0x40] sm:$0xff]  ;;  %v183_v44 = vld [vmem:[%s632_s5 + $0x48] sm:$0xff] }
   0xa   :  { %390 = vmatprep.subr.bf16.mxu0 %v446_v8  ;;  %v418_v42 = vpack.c.bf16 %v181_v40, %v180_v39  ;;  %v421_v45 = vpack.c.bf16 %v183_v44, %v182_v43  ;;  %v184_v46 = vld [vmem:[%s632_s5 + $0x50] sm:$0xff]  ;;  %v185_v47 = vld [vmem:[%s632_s5 + $0x58] sm:$0xff]  ;;  %v186_v49 = vld [vmem:[%s632_s5 + $0x60] sm:$0xff] }
   0xb   :  { %443 = vset.pattern.permute.xlu0 %v448_v13  ;;  %v424_v48 = vpack.c.bf16 %v185_v47, %v184_v46  ;;  %v187_v50 = vld [vmem:[%s632_s5 + $0x68] sm:$0xff]  ;;  %v274_v52 = vld [vmem:[%s633_s1] ss:$0 sm:$0xff]  ;;  %v275_v57 = vld [vmem:[%s633_s1 + $0x1] ss:$0 sm:$0xff] }
   0xc   :  { %413 = vmatpush3.bf16.msra.mxu1 %v412_v32  ;;  %v427_v51 = vpack.c.bf16 %v187_v50, %v186_v49  ;;  %v273_v56 = vld [vmem:[%s634_s2] ss:$0 sm:$0xff]  ;;  %v276_v58 = vld [vmem:[%s633_s1 + $0x2] ss:$0 sm:$0xff]  ;;  %v277_v60 = vld [vmem:[%s633_s1 + $0x3] ss:$0 sm:$0xff] }
   0xd   :  { %392 = vmatpush3.bf16.msra.mxu0 %v391_v14  ;;  %414 = vmatprep.subr.bf16.mxu1 %v446_v8  ;;  %v188_v6 = vld [vmem:[%s632_s5 + $0x70] sm:$0xff]  ;;  %v189_v7 = vld [vmem:[%s632_s5 + $0x78] sm:$0xff]  ;;  %v278_v9 = vld [vmem:[%s635_s4] ss:$0 sm:$0xff] }
   0xe   :  { %393 = vmatprep.subr.bf16.mxu0 %v446_v8  ;;  %v279_v14 = vld [vmem:[%s636_s6] ss:$0 sm:$0xff] }
  0x10   :  { %416 = vmatpush3.bf16.msra.mxu1 %v415_v38 }
  0x11   :  { %395 = vmatpush3.bf16.msra.mxu0 %v394_v17  ;;  %417 = vmatprep.subr.bf16.mxu1 %v446_v8 }
  0x12   :  { %396 = vmatprep.subr.bf16.mxu0 %v446_v8 }
  0x14   :  { %419 = vmatpush3.bf16.msra.mxu1 %v418_v42 }
  0x15   :  { %398 = vmatpush3.bf16.msra.mxu0 %v397_v20  ;;  %420 = vmatprep.subr.bf16.mxu1 %v446_v8 }
  0x16   :  { %399 = vmatprep.subr.bf16.mxu0 %v446_v8 }
  0x18   :  { %422 = vmatpush3.bf16.msra.mxu1 %v421_v45 }
  0x19   :  { %401 = vmatpush3.bf16.msra.mxu0 %v400_v29  ;;  %423 = vmatprep.subr.bf16.mxu1 %v446_v8 }
  0x1a   :  { %402 = vmatprep.subr.bf16.mxu0 %v446_v8 }
  0x1c   :  { %425 = vmatpush3.bf16.msra.mxu1 %v424_v48 }
  0x1d   :  { %404 = vmatpush3.bf16.msra.mxu0 %v403_v35  ;;  %426 = vmatprep.subr.bf16.mxu1 %v446_v8 }
  0x1e   :  { %405 = vmatprep.subr.bf16.mxu0 %v446_v8 }
  0x20   :  { %428 = vmatpush3.bf16.msra.mxu1 %v427_v51 }
  0x21   :  { %407 = vmatpush3.bf16.msra.mxu0 %v406_v41  ;;  %429 = vmatprep.subr.bf16.mxu1 %v446_v8  ;;  %v430_v8 = vpack.c.bf16 %v189_v7, %v188_v6 }
  0x24   :  { %431 = vmatpush3.bf16.msra.mxu1 %v430_v8 }
  0x81   :  { %v38_v53 = vpop.permute.xlu0 %37  ;;  %v60_v54 = vpop.permute.xlu1 %59 }
  0x82   :  { %v44_v55 = vmul.f32 %v274_v52, %v38_v53  ;;  %v66_v0 = vmul.f32 %v276_v58, %v60_v54 }
  0x84   :  { %v45_v62 = vadd.f32 %v273_v56, %v44_v55 }
  0x86   :  { %v49_v59 = vpop.permute.xlu0 %48 }
  0x87   :  { %v71_v61 = vpop.permute.xlu1 %70  ;;  %v55_v63 = vmul.f32 %v275_v57, %v49_v59 }
  0x88   :  { %v77_v2 = vmul.f32 %v277_v60, %v71_v61 }
  0x89   :  { %v56_v1 = vadd.f32 %v55_v63, %v45_v62 }
  0x8b   :  { %v67_v3 = vadd.f32 %v66_v0, %v56_v1 }
  0x8d   :  { %v78_v4 = vadd.f32 %v77_v2, %v67_v3 }
  0x8f   :  { %v79_v5 = vmax.f32 %v78_v4, 0.0 }
  0x91   :  { %347 = vmatmul.mubr.f32.vlgmr.msra.gmra.mrb[0].mxu0 %v79_v5 }
 0x164   :  { %v169_v10 = vpop.f32.mrb[0].mxu0 }
 0x165   :  { %v170_v11 = vadd.f32 %v278_v9, %v169_v10  ;;  %v348_v12 = vpop.f32.mrb[1].mxu0 }
 0x167   :  { %v173_v13 = vmax.f32 %v170_v11, 0.0 }
 0x169   :  { %382 = vmatmul.mubr.f32.vlgmr.msra.gmra.mrb[0].mxu1 %v173_v13 }
 0x23c   :  { %v263_v15 = vpop.f32.mrb[0].mxu1 }
 0x23d   :  { %v264_v16 = vadd.f32 %v279_v14, %v263_v15  ;;  %v383_v17 = vpop.f32.mrb[1].mxu1 }
 0x23f   :  { %268 = vst.msk [vmem:[%s637_s7] sm:$0xff] %vm267_vm1, %v264_v16 }

</bundles_post_ra>
